<compile_context>
chip_gen: v7x
topology: tpu7x:2x2x1
jax: 0.10.0
libtpu: 0.0.40
codegen_flags: <defaults>
</compile_context>

<pallas_src>
import jax
import jax.numpy as jnp
from jax.experimental import pallas as pl
from jax.experimental.pallas import tpu as pltpu

LANE = 128      # lane width (last-dim tiling)
SUBLANE = 8     # f32 sublane count (second-to-last-dim tiling)


def _round_up(x: int, m: int) -> int:
    return (x + m - 1) // m * m


def _batch_map(i):      # batch-tiled operands
    return (i, 0)


def _const_map(i):      # VMEM-resident weights / biases (same block every step)
    return (0, 0)


# ---------------------------------------------------------------------------
# Kernel: fused pair-encoder + classifier MLP over one batch tile.
# Ref order: x, enc_w, enc_b, (w0, b0), ..., (w_{n-1}, b_{n-1}), out
# ---------------------------------------------------------------------------
def _make_kernel(n_cls_layers: int, feat_p: int):
    def kernel(*refs):
        x_ref = refs[0]                     # (TB, 2*feat_p) f32
        enc_w = refs[1][...]                # (feat_p, E)    bf16
        enc_b = refs[2][...]                # (1, E)         f32
        o_ref = refs[-1]                    # (TB, V_pad)    f32

        # Shared encoder applied to each region; RHS weight tile reused for
        # both dots.  Lane slices are 128-aligned (feat_p % 128 == 0) -> views.
        x0 = x_ref[:, :feat_p].astype(jnp.bfloat16)
        x1 = x_ref[:, feat_p:].astype(jnp.bfloat16)
        h0 = jnp.dot(x0, enc_w, preferred_element_type=jnp.float32) + enc_b
        h1 = jnp.dot(x1, enc_w, preferred_element_type=jnp.float32) + enc_b
        h0 = jnp.maximum(h0, 0.0)
        h1 = jnp.maximum(h1, 0.0)
        h = jnp.concatenate([h0, h1], axis=-1)          # (TB, 2E) f32

        # Classifier MLP: ReLU on hidden layers, raw logits from the last.
        for i in range(n_cls_layers):
            w = refs[3 + 2 * i][...]                    # (Cin, Cout) bf16
            b = refs[4 + 2 * i][...]                    # (1, Cout)   f32
            h = jnp.dot(h.astype(jnp.bfloat16), w,
                        preferred_element_type=jnp.float32) + b
            if i < n_cls_layers - 1:
                h = jnp.maximum(h, 0.0)

        o_ref[...] = h.astype(o_ref.dtype)
    return kernel


def _fused_forward(x_flat, packed, *, tile_b=256):
    """x_flat: (B, 2*feat_p) f32, feat_p % 128 == 0.
    packed = {"enc": (We bf16 (feat_p, E), be f32 (1, E)),
              "cls": [(W bf16 (cin, cout), b f32 (1, cout)), ...]}  (all dims %128==0)
    Returns (B, cout_last) f32.
    """
    B, c0 = x_flat.shape
    feat_p = packed["enc"][0].shape[0]
    assert c0 == 2 * feat_p
    n_cls = len(packed["cls"])
    c_out = packed["cls"][-1][0].shape[1]

    # Batch tile: multiple of 8 sublanes, capped so tiny batches stay one step.
    tb = _round_up(min(int(tile_b), _round_up(B, SUBLANE)), SUBLANE)
    b_pad = _round_up(B, tb)
    if b_pad != B:
        x_flat = jnp.pad(x_flat, ((0, b_pad - B), (0, 0)))

    flat_inputs = [x_flat, packed["enc"][0], packed["enc"][1]]
    in_specs = [
        pl.BlockSpec((tb, c0), _batch_map),
        pl.BlockSpec(packed["enc"][0].shape, _const_map),
        pl.BlockSpec(packed["enc"][1].shape, _const_map),
    ]
    for w, b in packed["cls"]:
        flat_inputs += [w, b]
        in_specs.append(pl.BlockSpec(w.shape, _const_map))
        in_specs.append(pl.BlockSpec(b.shape, _const_map))

    out = pl.pallas_call(
        _make_kernel(n_cls, feat_p),
        out_shape=jax.ShapeDtypeStruct((b_pad, c_out), jnp.float32),
        grid=(b_pad // tb,),
        in_specs=in_specs,
        out_specs=pl.BlockSpec((tb, c_out), _batch_map),
        compiler_params=pltpu.CompilerParams(
            # batch tiles are independent -> shard across TCs on v7x.
            dimension_semantics=("parallel",)),
    )(*flat_inputs)
    return out[:B]


# ---------------------------------------------------------------------------
# Model construction (logical, unpadded, f32) and packing into kernel layout.
# ---------------------------------------------------------------------------
def init_model(key, *, in_channels, spatial, latent_dim, hidden_dims, num_views):
    """pair_encoder   : shared Linear(F -> latent_dim) + ReLU per region
       pair_classifier: MLP [2*latent_dim] + hidden_dims + [num_views]"""
    assert latent_dim % LANE == 0, "latent_dim must be a multiple of 128"
    assert all(h % LANE == 0 for h in hidden_dims), "hidden dims must be multiples of 128"
    feat = in_channels * spatial ** 3

    def _linear(k, cin, cout):
        kw, kb = jax.random.split(k)
        bound = 1.0 / jnp.sqrt(jnp.float32(cin))
        w = jax.random.uniform(kw, (cin, cout), jnp.float32, -bound, bound)
        b = jax.random.uniform(kb, (cout,), jnp.float32, -bound, bound)
        return w, b

    k_enc, key = jax.random.split(key)
    enc = _linear(k_enc, feat, latent_dim)

    dims = [2 * latent_dim] + list(hidden_dims) + [num_views]
    cls = []
    for cin, cout in zip(dims[:-1], dims[1:]):
        k_l, key = jax.random.split(key)
        cls.append(_linear(k_l, cin, cout))
    return {"enc": enc, "cls": cls}


def pack_params(model):
    """Pack logical params into the lane-padded, bf16-weight kernel layout."""
    enc_w, enc_b = model["enc"]
    feat, latent = enc_w.shape
    feat_p = _round_up(feat, LANE)

    # Zero-pad encoder input features to 128 lanes (padded lanes contribute 0).
    we = jnp.zeros((feat_p, latent), jnp.float32).at[:feat, :].set(enc_w)
    be = enc_b[None, :]
    packed_cls = []
    for w, b in model["cls"]:
        cin, cout = w.shape
        cout_p = _round_up(cout, LANE)          # only the final V needs padding
        wp = jnp.zeros((cin, cout_p), jnp.float32).at[:, :cout].set(w)
        bp = jnp.zeros((1, cout_p), jnp.float32).at[0, :cout].set(b)
        packed_cls.append((wp.astype(jnp.bfloat16), bp))
    return {"enc": (we.astype(jnp.bfloat16), be), "cls": packed_cls}


def neighbor_location_predictor_forward(x, packed, *, num_views, tile_b=256):
    """x: (B, 2, C, W, H, D) f32 -> (B, num_views) f32 logits."""
    B, two = x.shape[0], x.shape[1]
    assert two == 2
    feat = x.shape[2] * x.shape[3] * x.shape[4] * x.shape[5]
    feat_p = packed["enc"][0].shape[0]

    # Layout plumbing (outside the kernel): flatten each region, zero-pad its
    # feature block to 128 lanes, concatenate the pair along lanes.
    xr = x.reshape(B, 2, feat)
    if feat_p != feat:
        xr = jnp.pad(xr, ((0, 0), (0, 0), (0, feat_p - feat)))
    x_flat = xr.reshape(B, 2 * feat_p)

    logits_padded = _fused_forward(x_flat, packed, tile_b=tile_b)
    return logits_padded[:, :num_views]


# ---------------------------------------------------------------------------
# Pure-JAX reference (same bf16-matmul / f32-accumulate precision).
# ---------------------------------------------------------------------------
def reference_forward(x, model):
    enc_w, enc_b = model["enc"]
    B = x.shape[0]
    feat = enc_w.shape[0]
    xr = x.reshape(B, 2, feat)

    def dot_bf16(a, w):
        return jnp.dot(a.astype(jnp.bfloat16), w.astype(jnp.bfloat16),
                       preferred_element_type=jnp.float32)

    lat0 = jnp.maximum(dot_bf16(xr[:, 0], enc_w) + enc_b, 0.0)
    lat1 = jnp.maximum(dot_bf16(xr[:, 1], enc_w) + enc_b, 0.0)
    h = jnp.concatenate([lat0, lat1], axis=-1)
    n = len(model["cls"])
    for i, (w, b) in enumerate(model["cls"]):
        h = dot_bf16(h, w) + b
        if i < n - 1:
            h = jnp.maximum(h, 0.0)
    return h


if __name__ == "__main__":
    key = jax.random.PRNGKey(0)
    kx, kp = jax.random.split(key)

    # Small deterministic example: (B, 2, C, W, H, D)
    batch, in_channels, spatial = 24, 3, 4
    latent_dim, hidden_dims, num_views = 128, (128,), 6

    x = jax.random.normal(
        kx, (batch, 2, in_channels, spatial, spatial, spatial), jnp.float32)

    model = init_model(kp, in_channels=in_channels, spatial=spatial,
                       latent_dim=latent_dim, hidden_dims=hidden_dims,
                       num_views=num_views)
    packed = pack_params(model)

    # tile_b=8 -> grid=(3,): exercises batch tiling / pipelining on this example.
    out = neighbor_location_predictor_forward(x, packed, num_views=num_views,
                                              tile_b=8)
    out = jax.block_until_ready(out)

    ref = reference_forward(x, model)
    assert out.shape == (batch, num_views), out.shape
    assert jnp.allclose(out, ref, atol=2e-2, rtol=2e-2), (
        "mismatch vs reference", float(jnp.max(jnp.abs(out - ref))))

    print("KERNEL_OK")
</pallas_src>

<mosaic_0001>
module attributes {stable_mosaic.version = 11 : i64} {
  func.func @kernel(%arg0: i32, %arg1: memref<8x512xf32, #tpu.memory_space<vmem>>, %arg2: memref<256x128xbf16, #tpu.memory_space<vmem>>, %arg3: memref<1x128xf32, #tpu.memory_space<vmem>>, %arg4: memref<256x128xbf16, #tpu.memory_space<vmem>>, %arg5: memref<1x128xf32, #tpu.memory_space<vmem>>, %arg6: memref<128x128xbf16, #tpu.memory_space<vmem>>, %arg7: memref<1x128xf32, #tpu.memory_space<vmem>>, %arg8: memref<8x128xf32, #tpu.memory_space<vmem>>) attributes {dimension_semantics = [#tpu.dimension_semantics<parallel>], iteration_bounds = array<i64: 3>, scalar_prefetch = 0 : i64, scratch_operands = 0 : i64, tpu.core_type = #tpu.core_type<tc>, window_params = [{transform_indices = @transform_0, window_bounds = array<i64: 8, 512>}, {pipeline_mode = #tpu.pipeline_mode<synchronous>, transform_indices = @transform_1, window_bounds = array<i64: 256, 128>}, {pipeline_mode = #tpu.pipeline_mode<synchronous>, transform_indices = @transform_2, window_bounds = array<i64: 1, 128>}, {pipeline_mode = #tpu.pipeline_mode<synchronous>, transform_indices = @transform_3, window_bounds = array<i64: 256, 128>}, {pipeline_mode = #tpu.pipeline_mode<synchronous>, transform_indices = @transform_4, window_bounds = array<i64: 1, 128>}, {pipeline_mode = #tpu.pipeline_mode<synchronous>, transform_indices = @transform_5, window_bounds = array<i64: 128, 128>}, {pipeline_mode = #tpu.pipeline_mode<synchronous>, transform_indices = @transform_6, window_bounds = array<i64: 1, 128>}, {transform_indices = @transform_7, window_bounds = array<i64: 8, 128>}]} {
    %c0 = arith.constant 0 : index
    %c0_0 = arith.constant 0 : index
    %0 = vector.load %arg2[%c0, %c0_0] : memref<256x128xbf16, #tpu.memory_space<vmem>>, vector<256x128xbf16>
    %c0_1 = arith.constant 0 : index
    %c0_2 = arith.constant 0 : index
    %1 = vector.load %arg3[%c0_1, %c0_2] : memref<1x128xf32, #tpu.memory_space<vmem>>, vector<1x128xf32>
    %c0_3 = arith.constant 0 : index
    %c0_4 = arith.constant 0 : index
    %2 = vector.load %arg1[%c0_3, %c0_4] : memref<8x512xf32, #tpu.memory_space<vmem>>, vector<8x256xf32>
    %3 = arith.truncf %2 : vector<8x256xf32> to vector<8x256xbf16>
    %c0_5 = arith.constant 0 : index
    %c256 = arith.constant 256 : index
    %4 = vector.load %arg1[%c0_5, %c256] : memref<8x512xf32, #tpu.memory_space<vmem>>, vector<8x256xf32>
    %5 = arith.truncf %4 : vector<8x256xf32> to vector<8x256xbf16>
    %cst = arith.constant dense<0.000000e+00> : vector<8x128xf32>
    %6 = tpu.matmul %3, %0, %cst {dimension_numbers = #tpu.dot_dimension_numbers<[1], [0], [0], [1], [0, 0, 1, 1], [], []>} : vector<8x256xbf16>, vector<256x128xbf16>, vector<8x128xf32> -> vector<8x128xf32>
    %7 = vector.broadcast %1 : vector<1x128xf32> to vector<8x128xf32>
    %8 = arith.addf %6, %7 : vector<8x128xf32>
    %cst_6 = arith.constant dense<0.000000e+00> : vector<8x128xf32>
    %9 = tpu.matmul %5, %0, %cst_6 {dimension_numbers = #tpu.dot_dimension_numbers<[1], [0], [0], [1], [0, 0, 1, 1], [], []>} : vector<8x256xbf16>, vector<256x128xbf16>, vector<8x128xf32> -> vector<8x128xf32>
    %10 = vector.broadcast %1 : vector<1x128xf32> to vector<8x128xf32>
    %11 = arith.addf %9, %10 : vector<8x128xf32>
    %cst_7 = arith.constant 0.000000e+00 : f32
    %12 = vector.broadcast %cst_7 : f32 to vector<8x128xf32>
    %13 = arith.maximumf %8, %12 : vector<8x128xf32>
    %cst_8 = arith.constant 0.000000e+00 : f32
    %14 = vector.broadcast %cst_8 : f32 to vector<8x128xf32>
    %15 = arith.maximumf %11, %14 : vector<8x128xf32>
    %16 = tpu.concatenate %13, %15 in 1 : vector<8x128xf32>, vector<8x128xf32> -> vector<8x256xf32>
    %c0_9 = arith.constant 0 : index
    %c0_10 = arith.constant 0 : index
    %17 = vector.load %arg4[%c0_9, %c0_10] : memref<256x128xbf16, #tpu.memory_space<vmem>>, vector<256x128xbf16>
    %c0_11 = arith.constant 0 : index
    %c0_12 = arith.constant 0 : index
    %18 = vector.load %arg5[%c0_11, %c0_12] : memref<1x128xf32, #tpu.memory_space<vmem>>, vector<1x128xf32>
    %19 = arith.truncf %16 : vector<8x256xf32> to vector<8x256xbf16>
    %cst_13 = arith.constant dense<0.000000e+00> : vector<8x128xf32>
    %20 = tpu.matmul %19, %17, %cst_13 {dimension_numbers = #tpu.dot_dimension_numbers<[1], [0], [0], [1], [0, 0, 1, 1], [], []>} : vector<8x256xbf16>, vector<256x128xbf16>, vector<8x128xf32> -> vector<8x128xf32>
    %21 = vector.broadcast %18 : vector<1x128xf32> to vector<8x128xf32>
    %22 = arith.addf %20, %21 : vector<8x128xf32>
    %cst_14 = arith.constant 0.000000e+00 : f32
    %23 = vector.broadcast %cst_14 : f32 to vector<8x128xf32>
    %24 = arith.maximumf %22, %23 : vector<8x128xf32>
    %c0_15 = arith.constant 0 : index
    %c0_16 = arith.constant 0 : index
    %25 = vector.load %arg6[%c0_15, %c0_16] : memref<128x128xbf16, #tpu.memory_space<vmem>>, vector<128x128xbf16>
    %c0_17 = arith.constant 0 : index
    %c0_18 = arith.constant 0 : index
    %26 = vector.load %arg7[%c0_17, %c0_18] : memref<1x128xf32, #tpu.memory_space<vmem>>, vector<1x128xf32>
    %27 = arith.truncf %24 : vector<8x128xf32> to vector<8x128xbf16>
    %cst_19 = arith.constant dense<0.000000e+00> : vector<8x128xf32>
    %28 = tpu.matmul %27, %25, %cst_19 {dimension_numbers = #tpu.dot_dimension_numbers<[1], [0], [0], [1], [0, 0, 1, 1], [], []>} : vector<8x128xbf16>, vector<128x128xbf16>, vector<8x128xf32> -> vector<8x128xf32>
    %29 = vector.broadcast %26 : vector<1x128xf32> to vector<8x128xf32>
    %30 = arith.addf %28, %29 : vector<8x128xf32>
    %c0_20 = arith.constant 0 : index
    %c0_21 = arith.constant 0 : index
    %31 = vector.load %arg8[%c0_20, %c0_21] : memref<8x128xf32, #tpu.memory_space<vmem>>, vector<8x128xf32>
    tpu.vector_store %arg8[%c0_20, %c0_21], %30 {strides = array<i32>} : memref<8x128xf32, #tpu.memory_space<vmem>>, vector<8x128xf32>,
    return
  }
  func.func @transform_0(%arg0: i32) -> (i32, i32) {
    %c0_i32 = arith.constant 0 : i32
    %c0_i32_0 = arith.constant 0 : i32
    return %arg0, %c0_i32 : i32, i32
  }
  func.func @transform_1(%arg0: i32) -> (i32, i32) {
    %c0_i32 = arith.constant 0 : i32
    %c0_i32_0 = arith.constant 0 : i32
    %c0_i32_1 = arith.constant 0 : i32
    return %c0_i32, %c0_i32_0 : i32, i32
  }
  func.func @transform_2(%arg0: i32) -> (i32, i32) {
    %c0_i32 = arith.constant 0 : i32
    %c0_i32_0 = arith.constant 0 : i32
    %c0_i32_1 = arith.constant 0 : i32
    return %c0_i32, %c0_i32_0 : i32, i32
  }
  func.func @transform_3(%arg0: i32) -> (i32, i32) {
    %c0_i32 = arith.constant 0 : i32
    %c0_i32_0 = arith.constant 0 : i32
    %c0_i32_1 = arith.constant 0 : i32
    return %c0_i32, %c0_i32_0 : i32, i32
  }
  func.func @transform_4(%arg0: i32) -> (i32, i32) {
    %c0_i32 = arith.constant 0 : i32
    %c0_i32_0 = arith.constant 0 : i32
    %c0_i32_1 = arith.constant 0 : i32
    return %c0_i32, %c0_i32_0 : i32, i32
  }
  func.func @transform_5(%arg0: i32) -> (i32, i32) {
    %c0_i32 = arith.constant 0 : i32
    %c0_i32_0 = arith.constant 0 : i32
    %c0_i32_1 = arith.constant 0 : i32
    return %c0_i32, %c0_i32_0 : i32, i32
  }
  func.func @transform_6(%arg0: i32) -> (i32, i32) {
    %c0_i32 = arith.constant 0 : i32
    %c0_i32_0 = arith.constant 0 : i32
    %c0_i32_1 = arith.constant 0 : i32
    return %c0_i32, %c0_i32_0 : i32, i32
  }
  func.func @transform_7(%arg0: i32) -> (i32, i32) {
    %c0_i32 = arith.constant 0 : i32
    %c0_i32_0 = arith.constant 0 : i32
    return %arg0, %c0_i32 : i32, i32
  }
}

</mosaic_0001>

<bundles_post_ra>
// kernel: tpu_custom_call.1
= control target key start
LH: loop header
LB: loop body
LE: loop exit
PB: predicated region body
PF: predicated region fallthrough
CT: control target
= control target key end

     0   :  { %12 = vsyncpa [#allocation3], 0  ;;  %s1764_s0 = inlined_call_operand.hbm [shape: f32[24,512], index: 0, kind: input, shape index: {}]   ;;  %s1765_s1 = inlined_call_operand.hbm [shape: bf16[256,128], index: 1, kind: input, shape index: {}]   ;;  %s1766_s2 = inlined_call_operand.vmem [shape: f32[1,128], index: 2, kind: input, shape index: {}]   ;;  %s1767_s3 = inlined_call_operand.hbm [shape: bf16[256,128], index: 3, kind: input, shape index: {}]   ;;  %s1768_s4 = inlined_call_operand.vmem [shape: f32[1,128], index: 4, kind: input, shape index: {}]   ;;  %s1769_s5 = inlined_call_operand.hbm [shape: bf16[128,128], index: 5, kind: input, shape index: {}]   ;;  %s1770_s6 = inlined_call_operand.vmem [shape: f32[1,128], index: 6, kind: input, shape index: {}]   ;;  %s1771_s7 = inlined_call_operand.hbm [shape: f32[24,128], index: 7, kind: output, shape index: {}]  }
   0x1   :  { %14 = vsyncpa [#allocation3 + $0x1], 0 }
   0x2   :  { %15 = vsyncpa [#allocation6], 0 }
   0x3   :  { %16 = vsyncpa [#allocation9], 0 }
   0x4   :  { %17 = vsyncpa [#allocation4], 0 }
   0x5   :  { %19 = vsyncpa [#allocation4 + $0x1], 0  ;;  %s1487_s24 = smov 0   ;;  %s1489_s25 = smov 0  }
   0x6   :  { %s1491_s26 = smov 0   ;;  %s1493_s27 = smov 0  }
   0x7 LB: > { %s1508_s28 = sadd.s32 4294967295, %s1436_s27   ;;  %s969_s29 = sadd.s32 4294967294, %s1436_s27   ;;  %s1436_s27 = sphi %s1493_s27, %s1796_s27   ;;  %s1432_s26 = sphi %s1491_s26, %s1795_s26   ;;  %s1428_s25 = sphi %s1489_s25, %s1794_s25   ;;  %s1424_s24 = sphi %s1487_s24, %s1793_s24  }
   0x8   : > { %p45_p0 = scmp.ne.s32.totalorder %s1428_s25, %s1424_s24  ;;  %p1772_p1 = scmp.eq.s32.totalorder %s1508_s28, 0 }
   0x9   : > { %p201_p3 = scmp.eq.s32.totalorder %s969_s29, 2  ;;  %p970_p5 = scmp.ge.s32.totalorder %s1436_s27, 1 }
   0xa   : > { %p1517_p4 = por %p1772_p1, %p45_p0  ;;  %p208_p7 = scmp.lt.s32.totalorder %s1436_s27, 4 }
   0xb   : > { %p1522_p6 = por %p201_p3, %p45_p0  ;;  %s1438_s10 = smov [#allocation5]  }
   0xc   : > { %s1776_s30 = scalar_select %p1517_p4, 1, 0 }
   0xd   : > { %s1777_s8 = scalar_select %p1522_p6, 1, 0 }
   0xe   : > { %p1527_p8 = pnand %p970_p5, %p208_p7  ;;  %s220_s11 = sshll.u32 %s1438_s10, 4  ;;  %s1531_s11 = int_to_ptr.vmem [resolvable:$true] %s220_s11 }
   0xf   : > { %1778 = sst [smem:[#allocation15_spill]] %s1777_s8  ;;  %s1439_s13 = smov [#allocation7]  }
  0x10   : > { %s1779_s9 = scalar_select %p1527_p8, 1, 0 }
  0x11   : > { %p1143_p9 = pneg %p1527_p8  ;;  %s236_s14 = sshll.u32 %s1439_s13, 4  ;;  %s1541_s14 = int_to_ptr.vmem [resolvable:$true] %s236_s14 }
  0x12   : > { %s1440_s15 = smov [#allocation8]   ;;  %s1248_s19 = scalar_lea.hbm %s1765_s1, 2048 }
  0x13   : > { %p1537_p10 = pnand %p1143_p9, %p1772_p1  ;;  %s1543_s16 = sshll.u32 %s1440_s15, 4  ;;  %s253_s16 = int_to_ptr.vmem [resolvable:$true] %s1543_s16 }
  0x14   : > { %p1249_p11 = scmp.ne.s32.totalorder %s1765_s1, %s1248_s19  ;;  %p1255_p3 = scmp.lt.u32.totalorder %s1248_s19, %s1765_s1 }
  0x15   : > { %p1553_p12 = pneg %p1537_p10 }
  0x17   : > { %p1251_p13 = pnand %p1553_p12, %p1249_p11 }
  0x19   : > { %p1252_p0 = pneg %p1251_p13 }
  0x1b   : > { %p1257_p5 = pnand %p1255_p3, %p1252_p0 }
  0x1d   : > { %1260 = shalt.err (!%p1257_p5)
}
  0x1e   : > { %s1261_s10 = scalar_lea.vmem %s1531_s11, 2048  ;;  %p1269_p2 = scmp.lt.s32.totalorder %s1531_s11, %s1531_s11 }
  0x1f   : > { %p1262_p7 = scmp.ne.s32.totalorder %s1531_s11, %s1261_s10  ;;  %p1270_p6 = scmp.lt.s32.totalorder %s1261_s10, %s1261_s10 }
  0x21   : > { %p1264_p9 = pnand %p1262_p7, %p1553_p12  ;;  %p1271_p11 = por %p1270_p6, %p1269_p2 }
  0x23   : > { %p1265_p1 = pneg %p1264_p9 }
  0x25   : > { %p1272_p13 = pnand %p1271_p11, %p1265_p1 }
  0x27   : > { %1275 = shalt.err (!%p1272_p13)
}
  0x28   : > { %s1441_s13 = smov 64   ;;  %s1442_s15 = smov 4  }
  0x29   : > { %1146 = dma.hbm_to_vmem [thread:$0]  (!%p1537_p10), %s1765_s1, 2048, %s1531_s11, [#allocation6], %s1441_s13, %s1441_s13, %s1442_s15  }
  0x2a   : > { %s1276_s21 = scalar_lea.hbm %s1767_s3, 2048 }
  0x2b   : > { %p1277_p1 = scmp.ne.s32.totalorder %s1767_s3, %s1276_s21  ;;  %p1283_p0 = scmp.lt.u32.totalorder %s1276_s21, %s1767_s3 }
  0x2d   : > { %p1279_p2 = pnand %p1277_p1, %p1553_p12 }
  0x2f   : > { %p1280_p6 = pneg %p1279_p2 }
  0x31   : > { %p1285_p3 = pnand %p1283_p0, %p1280_p6 }
  0x33   : > { %1288 = shalt.err (!%p1285_p3)
}
  0x34   : > { %s1289_s11 = scalar_lea.vmem %s1541_s14, 2048  ;;  %p1297_p11 = scmp.lt.s32.totalorder %s1541_s14, %s1541_s14 }
  0x35   : > { %p1290_p5 = scmp.ne.s32.totalorder %s1541_s14, %s1289_s11  ;;  %p1298_p13 = scmp.lt.s32.totalorder %s1289_s11, %s1289_s11 }
  0x37   : > { %p1292_p7 = pnand %p1290_p5, %p1553_p12  ;;  %p1299_p1 = por %p1298_p13, %p1297_p11 }
  0x39   : > { %p1293_p9 = pneg %p1292_p7 }
  0x3b   : > { %p1300_p2 = pnand %p1299_p1, %p1293_p9 }
  0x3d   : > { %1303 = shalt.err (!%p1300_p2)
}
  0x3e   : > { %1149 = dma.hbm_to_vmem [thread:$0]  (!%p1537_p10), %s1767_s3, 2048, %s1541_s14, [#allocation6], %s1441_s13, %s1441_s13, %s1442_s15  }
  0x3f   : > { %s1304_s20 = scalar_lea.hbm %s1769_s5, 1024 }
  0x40   : > { %p1305_p6 = scmp.ne.s32.totalorder %s1769_s5, %s1304_s20  ;;  %p1311_p5 = scmp.lt.u32.totalorder %s1304_s20, %s1769_s5 }
  0x42   : > { %p1307_p0 = pnand %p1305_p6, %p1553_p12 }
  0x44   : > { %p1308_p3 = pneg %p1307_p0 }
  0x46   : > { %p1313_p7 = pnand %p1311_p5, %p1308_p3 }
  0x48   : > { %1316 = shalt.err (!%p1313_p7)
}
  0x49   : > { %s1317_s11 = scalar_lea.vmem %s253_s16, 1024  ;;  %p1325_p1 = scmp.lt.s32.totalorder %s253_s16, %s253_s16 }
  0x4a   : > { %p1318_p9 = scmp.ne.s32.totalorder %s253_s16, %s1317_s11  ;;  %p1326_p2 = scmp.lt.s32.totalorder %s1317_s11, %s1317_s11 }
  0x4c   : > { %p1320_p11 = pnand %p1318_p9, %p1553_p12  ;;  %p1327_p4 = por %p1326_p2, %p1325_p1 }
  0x4e   : > { %p1321_p13 = pneg %p1320_p11 }
  0x50   : > { %p1328_p8 = pnand %p1327_p4, %p1321_p13 }
  0x52   : > { %1331 = shalt.err (!%p1328_p8)
}
  0x53   : > { %1152 = dma.hbm_to_vmem [thread:$0]  (!%p1537_p10), %s1769_s5, 1024, %s253_s16, [#allocation9], %s1441_s13, %s1441_s13, %s1442_s15  }
  0x54   : > { %s1626_s22 = sadd.s32 1, %s1436_s27   ;;  %s32_s17 = sadd.s32 1, %s1432_s26 }
  0x55   : > { %s29_s12 = ssub.s32 %s1436_s27, %s1626_s22  ;;  %p39_p8 = scmp.ne.s32.totalorder %s1432_s26, %s1428_s25 }
  0x56   : > { %p30_p4 = scmp.eq.s32.totalorder %s29_s12, 0  ;;  %p40_p12 = scmp.eq.s32.totalorder %s1436_s27, 0 }
  0x57   : > { %p1164_p6 = scmp.lt.s32.totalorder %s1436_s27, 3  ;;  %p1782_p3 = scmp.eq.s32.totalorder %s1508_s28, 2 }
  0x58   : > { %s1636_s18 = scalar_select %p30_p4, %s1432_s26, %s32_s17  }
  0x59   : > { %p41_p0 = por %p40_p12, %p39_p8  ;;  %p1640_p5 = por %p1782_p3, %p39_p8 }
  0x5a   : > { %s269_s20 = sand.u32 1, %s1432_s26   ;;  %s1031_s21 = sshll.u32 %s1436_s27, 9 }
  0x5b   : > { %s975_s16 = sshll.u32 %s269_s20, 5  ;;  %s1649_s23 = scalar_lea.hbm %s1764_s0, %s1031_s21 }
  0x5c   : > { %s273_s29 = scalar_lea.vmem [#allocation2], %s975_s16  ;;  %p1651_p10 = pnand %p1164_p6, %p41_p0 }
  0x5d   : > { %s281_s10 = sshll.u32 %s273_s29, 4  ;;  %s270_s14 = scalar_lea.sflag [#allocation3], %s269_s20  ;;  %s1655_s10 = int_to_ptr.vmem [resolvable:$true] %s281_s10 }
  0x5e   : > { %s1332_s8 = scalar_lea.hbm %s1649_s23, 512  ;;  %p1334_p9 = pneg %p1651_p10 }
  0x5f   : > { %p1333_p7 = scmp.ne.s32.totalorder %s1649_s23, %s1332_s8  ;;  %s1337_s21 = scalar_lea.hbm %s1764_s0, 1536 }
  0x60   : > { %p1338_p1 = scmp.lt.u32.totalorder %s1649_s23, %s1764_s0  ;;  %p1339_p2 = scmp.lt.u32.totalorder %s1337_s21, %s1332_s8 }
  0x61   : > { %p1335_p11 = pnand %p1334_p9, %p1333_p7  ;;  %p1341_p8 = scmp.lt.u32.totalorder %s1332_s8, %s1649_s23 }
  0x62   : > { %p1340_p4 = por %p1339_p2, %p1338_p1 }
  0x63   : > { %p1336_p13 = pneg %p1335_p11 }
  0x64   : > { %p1342_p12 = por %p1341_p8, %p1340_p4 }
  0x66   : > { %p1343_p6 = pnand %p1342_p12, %p1336_p13 }
  0x68   : > { %1346 = shalt.err (!%p1343_p6)
}
  0x69   : > { %s1347_s20 = scalar_lea.vmem %s1655_s10, 512  ;;  %s1443_s15 = smov [#allocation2]  }
  0x6a   : > { %p1348_p0 = scmp.ne.s32.totalorder %s1655_s10, %s1347_s20  ;;  %s1352_s29 = sshll.u32 %s1443_s15, 4  ;;  %s1353_s29 = int_to_ptr.vmem [resolvable:$false] %s1352_s29 }
  0x6b   : > { %s1354_s12 = scalar_lea.vmem %s1353_s29, 1024  ;;  %p1355_p11 = scmp.lt.s32.totalorder %s1655_s10, %s1353_s29 }
  0x6c   : > { %p1350_p3 = pnand %p1348_p0, %p1334_p9  ;;  %p1356_p1 = scmp.lt.s32.totalorder %s1354_s12, %s1347_s20 }
  0x6e   : > { %p1351_p7 = pneg %p1350_p3  ;;  %p1357_p2 = por %p1356_p1, %p1355_p11 }
  0x70   : > { %p1358_p4 = pnand %p1357_p2, %p1351_p7 }
  0x72   : > { %1361 = shalt.err (!%p1358_p4)
}
  0x73   : > { %1156 = dma.hbm_to_vmem [thread:$0]  (!%p1651_p10), %s1649_s23, 512, %s1655_s10, %s270_s14  }
  0x74   : > { %p1785_p13 = scmp.ne.s32.totalorder %s1779_s9, 0 }
  0x75   : > { %s1685_s8 = sand.u32 (!%p1785_p13), 1, %s1428_s25   ;;  %p1786_p9 = scmp.ne.s32.totalorder (!%p1785_p13), %s1776_s30, 0 }
  0x76   : > { %290 = sbr.rel (%p1785_p13) target bundleno = 837 (0x345), region = 48  ;;  %s979_s17 = sshll.u32 (!%p1785_p13), %s1685_s8, 5 }
  0x77   : > { %s293_s21 = scalar_lea.sflag (!%p1785_p13), [#allocation3], %s1685_s8  ;;  %s1689_s16 = scalar_lea.vmem (!%p1785_p13), [#allocation2], %s979_s17 }
  0x7d   : > { %1407 = dma.done.wait (%p1786_p9), %s293_s21, 512  }
  0x7e   : > { %1409 = vsyncadd (%p1786_p9), %s293_s21, 4294966784  ;;  %p1787_p10 = scmp.eq.s32.totalorder %s1508_s28, 0 }
  0x80   : > { %1411 = dma.done.wait (%p1787_p10), [#allocation6], 4096   ;;  %p1788_p8 = pmov %p1787_p10 }
  0x82   : > { %1413 = vsyncadd (%p1788_p8), [#allocation6], 4294963200  ;;  %p1789_p12 = pmov %p1788_p8 }
  0x83   : > { %p1790_p6 = pmov %p1788_p8 }
  0x84   : > { %1415 = dma.done.wait (%p1789_p12), [#allocation9], 1024  }
  0x85   : > { %1417 = vsyncadd (%p1790_p6), [#allocation9], 4294966272  ;;  %v1208_v0 = vld [vmem:[#allocation5 + $0x40] sm:$0xff]   ;;  %v1210_v2 = vld [vmem:[#allocation5 + $0x48] sm:$0xff]   ;;  %v1444_v41 = vmov 0.0   ;;  %vm1445_vm0 = vmmov 0  }
  0x86   : > { %v1209_v1 = vld [vmem:[#allocation5] sm:$0xff]   ;;  %1032 = vmatprep.subr.bf16.mxu0 %v1208_v0  ;;  %1054 = vmatprep.subr.bf16.mxu1 %v1208_v0  ;;  %v1211_v3 = vld [vmem:[#allocation5 + $0x8] sm:$0xff]   ;;  %v1212_v4 = vld [vmem:[#allocation5 + $0x50] sm:$0xff]   ;;  %s983_s11 = sshll.u32 %s1685_s8, 3  ;;  %s1028_s20 = sshll.u32 %s1508_s28, 7 }
  0x87   : > { %1033 = vmatpush3.bf16.msra.mxu0 %v1209_v1  ;;  %1055 = vmatpush3.bf16.msra.mxu1 %v1209_v1  ;;  %v1213_v5 = vld [vmem:[#allocation5 + $0x10] sm:$0xff]   ;;  %v1214_v6 = vld [vmem:[#allocation5 + $0x58] sm:$0xff]   ;;  %v1216_v8 = vld [vmem:[#allocation5 + $0x60] sm:$0xff]   ;;  %s338_s15 = scalar_lea.vmem [#allocation10], %s983_s11  ;;  %s1721_s21 = scalar_lea.hbm %s1771_s7, %s1028_s20 }
  0x88   : > { %1034 = vmatprep.subr.bf16.mxu0 %v1210_v2  ;;  %1056 = vmatprep.subr.bf16.mxu1 %v1210_v2  ;;  %v1215_v7 = vld [vmem:[#allocation5 + $0x18] sm:$0xff]   ;;  %v1217_v9 = vld [vmem:[#allocation5 + $0x20] sm:$0xff]   ;;  %v1218_v10 = vld [vmem:[#allocation5 + $0x68] sm:$0xff]   ;;  %s870_s29 = sshll.u32 %s338_s15, 4  ;;  %s1446_s30 = smov [#allocation10]   ;;  %s1723_s29 = int_to_ptr.vmem [resolvable:$true] %s870_s29 }
  0x89   : > { %v374_v11 = vld [vmem:[%s1689_s16 + $0x8] sm:$0xff]  ;;  %v378_v12 = vld [vmem:[%s1689_s16 + $0x18] sm:$0xff]  ;;  %v1220_v16 = vld [vmem:[#allocation5 + $0x70] sm:$0xff]   ;;  %s1362_s28 = scalar_lea.vmem %s1723_s29, 128  ;;  %s1366_s9 = sshll.u32 %s1446_s30, 4  ;;  %s1367_s9 = int_to_ptr.vmem [resolvable:$false] %s1366_s9 }
  0x8a   : > { %v376_v13 = vpack.c.bf16 %v374_v11, %v374_v11  ;;  %v380_v14 = vpack.c.bf16 %v378_v12, %v378_v12  ;;  %v1219_v15 = vld [vmem:[#allocation5 + $0x28] sm:$0xff]   ;;  %v1221_v17 = vld [vmem:[#allocation5 + $0x30] sm:$0xff]   ;;  %v1222_v18 = vld [vmem:[#allocation5 + $0x78] sm:$0xff]   ;;  %p1363_p0 = scmp.ne.s32.totalorder %s1723_s29, %s1362_s28  ;;  %s1368_s23 = scalar_lea.vmem %s1367_s9, 256 }
  0x8b   : > { %1035 = vmatpush3.bf16.msra.mxu0 %v1211_v3  ;;  %1057 = vmatpush3.bf16.msra.mxu1 %v1211_v3  ;;  %v1223_v19 = vld [vmem:[#allocation5 + $0x38] sm:$0xff]   ;;  %v373_v20 = vld [vmem:[%s1689_s16] sm:$0xff]  ;;  %v377_v21 = vld [vmem:[%s1689_s16 + $0x10] sm:$0xff]  ;;  %s857_s16 = scalar_lea.sflag [#allocation4], %s1685_s8  ;;  %p1369_p11 = scmp.lt.s32.totalorder %s1723_s29, %s1367_s9 }
  0x8c   : > { %1036 = vmatprep.subr.bf16.mxu0 %v1212_v4  ;;  %1058 = vmatprep.subr.bf16.mxu1 %v1212_v4  ;;  %v1224_v22 = vld [vmem:[#allocation7 + $0x40] sm:$0xff]   ;;  %v375_v24 = vpack.c.bf16 %v373_v20, %v373_v20  ;;  %v379_v25 = vpack.c.bf16 %v377_v21, %v377_v21  ;;  %v1226_v26 = vld [vmem:[#allocation7 + $0x48] sm:$0xff]   ;;  %v1228_v28 = vld [vmem:[#allocation7 + $0x50] sm:$0xff]   ;;  %p1364_p3 = pnand %p1363_p0, %p1640_p5  ;;  %p1370_p1 = scmp.lt.s32.totalorder %s1368_s23, %s1362_s28 }
  0x8d   : > { %515 = vmatprep.mubr.bf16.mxu0 %v376_v13  ;;  %555 = vmatprep.mubr.bf16.mxu1 %v380_v14  ;;  %v1225_v23 = vld [vmem:[#allocation7] sm:$0xff]   ;;  %v1227_v27 = vld [vmem:[#allocation7 + $0x8] sm:$0xff]   ;;  %v1229_v29 = vld [vmem:[#allocation7 + $0x10] sm:$0xff]  }
  0x8e   : > { %v1230_v30 = vld [vmem:[#allocation7 + $0x58] sm:$0xff]   ;;  %v1232_v32 = vld [vmem:[#allocation7 + $0x60] sm:$0xff]   ;;  %v1234_v34 = vld [vmem:[#allocation7 + $0x68] sm:$0xff]   ;;  %p1365_p7 = pneg %p1364_p3  ;;  %p1371_p2 = por %p1370_p1, %p1369_p11 }
  0x8f   : > { %1037 = vmatpush3.bf16.msra.mxu0 %v1213_v5  ;;  %1059 = vmatpush3.bf16.msra.mxu1 %v1213_v5  ;;  %v1231_v31 = vld [vmem:[#allocation7 + $0x18] sm:$0xff]   ;;  %v1233_v33 = vld [vmem:[#allocation7 + $0x20] sm:$0xff]   ;;  %v1235_v35 = vld [vmem:[#allocation7 + $0x28] sm:$0xff]  }
  0x90   : > { %1038 = vmatprep.subr.bf16.mxu0 %v1214_v6  ;;  %1060 = vmatprep.subr.bf16.mxu1 %v1214_v6  ;;  %v1236_v36 = vld [vmem:[#allocation7 + $0x70] sm:$0xff]   ;;  %v1238_v38 = vld [vmem:[#allocation7 + $0x78] sm:$0xff]   ;;  %v1240_v40 = vld [vmem:[#allocation8] sm:$0xff]   ;;  %p1372_p4 = pnand %p1371_p2, %p1365_p7 }
  0x91   : > { %v1237_v37 = vld [vmem:[#allocation7 + $0x30] sm:$0xff]   ;;  %v1239_v39 = vld [vmem:[#allocation7 + $0x38] sm:$0xff]   ;;  %v1241_v42 = vld [vmem:[#allocation8 + $0x8] sm:$0xff]  }
  0x92   : > { %v1242_v43 = vld [vmem:[#allocation8 + $0x10] sm:$0xff]   ;;  %v1243_v44 = vld [vmem:[#allocation8 + $0x18] sm:$0xff]   ;;  %v1244_v45 = vld [vmem:[#allocation8 + $0x20] sm:$0xff]  }
  0x93   : > { %1039 = vmatpush3.bf16.msra.mxu0 %v1215_v7  ;;  %1061 = vmatpush3.bf16.msra.mxu1 %v1215_v7  ;;  %v1245_v46 = vld [vmem:[#allocation8 + $0x28] sm:$0xff]   ;;  %v984_v49 = vld [vmem:[%s1766_s2] ss:$0 sm:$0xff]  ;;  %v1246_v0 = vld [vmem:[#allocation8 + $0x30] sm:$0xff]  }
  0x94   : > { %1040 = vmatprep.subr.bf16.mxu0 %v1216_v8  ;;  %1062 = vmatprep.subr.bf16.mxu1 %v1216_v8  ;;  %v1247_v1 = vld [vmem:[#allocation8 + $0x38] sm:$0xff]   ;;  %v1001_v3 = vld [vmem:[%s1768_s4] ss:$0 sm:$0xff] }
  0x95   : > { %v1018_v11 = vld [vmem:[%s1770_s6] ss:$0 sm:$0xff] }
  0x97   : > { %1041 = vmatpush3.bf16.msra.mxu0 %v1217_v9  ;;  %1063 = vmatpush3.bf16.msra.mxu1 %v1217_v9 }
  0x98   : > { %1042 = vmatprep.subr.bf16.mxu0 %v1218_v10  ;;  %1064 = vmatprep.subr.bf16.mxu1 %v1218_v10 }
  0x9b   : > { %1043 = vmatpush3.bf16.msra.mxu0 %v1219_v15  ;;  %1065 = vmatpush3.bf16.msra.mxu1 %v1219_v15 }
  0x9c   : > { %1044 = vmatprep.subr.bf16.mxu0 %v1220_v16  ;;  %1066 = vmatprep.subr.bf16.mxu1 %v1220_v16 }
  0x9f   : > { %1045 = vmatpush3.bf16.msra.mxu0 %v1221_v17  ;;  %1067 = vmatpush3.bf16.msra.mxu1 %v1221_v17 }
  0xa0   : > { %1046 = vmatprep.subr.bf16.mxu0 %v1222_v18  ;;  %1068 = vmatprep.subr.bf16.mxu1 %v1222_v18 }
  0xa3   : > { %1047 = vmatpush3.bf16.msra.mxu0 %v1223_v19  ;;  %1069 = vmatpush3.bf16.msra.mxu1 %v1223_v19 }
  0xa4   : > { %1076 = vmatprep.subr.bf16.mxu0 %v1224_v22  ;;  %1107 = vmatprep.subr.bf16.mxu1 %v1444_v41 }
  0xa6   : > { %516 = vmatmul.mubr.bf16.vlgmr.msra.gmra.mrb[0].mxu0 %v375_v24  ;;  %556 = vmatmul.mubr.bf16.vlgmr.msra.gmra.mrb[0].mxu1 %v379_v25 }
  0xa7   : > { %1077 = vmatpush3.bf16.msra.mxu0 %v1225_v23  ;;  %1108 = vmatpush3.bf16.msra.mxu1 %v1240_v40 }
  0xa8   : > { %1078 = vmatprep.subr.bf16.mxu0 %v1226_v26  ;;  %1109 = vmatprep.subr.bf16.mxu1 %v1444_v41 }
  0xa9   : > { %1123 = vmatprep.mubr.msk.bf16.mxu1 %vm1445_vm0, %v1444_v41 }
  0xab   : > { %1079 = vmatpush3.bf16.msra.mxu0 %v1227_v27  ;;  %1110 = vmatpush3.bf16.msra.mxu1 %v1241_v42 }
  0xac   : > { %1080 = vmatprep.subr.bf16.mxu0 %v1228_v28  ;;  %1111 = vmatprep.subr.bf16.mxu1 %v1444_v41 }
  0xaf   : > { %1081 = vmatpush3.bf16.msra.mxu0 %v1229_v29  ;;  %1112 = vmatpush3.bf16.msra.mxu1 %v1242_v43 }
  0xb0   : > { %1082 = vmatprep.subr.bf16.mxu0 %v1230_v30  ;;  %1113 = vmatprep.subr.bf16.mxu1 %v1444_v41 }
  0xb3   : > { %1083 = vmatpush3.bf16.msra.mxu0 %v1231_v31  ;;  %1114 = vmatpush3.bf16.msra.mxu1 %v1243_v44 }
  0xb4   : > { %1084 = vmatprep.subr.bf16.mxu0 %v1232_v32  ;;  %1115 = vmatprep.subr.bf16.mxu1 %v1444_v41 }
  0xb7   : > { %1085 = vmatpush3.bf16.msra.mxu0 %v1233_v33  ;;  %1116 = vmatpush3.bf16.msra.mxu1 %v1244_v45 }
  0xb8   : > { %1086 = vmatprep.subr.bf16.mxu0 %v1234_v34  ;;  %1117 = vmatprep.subr.bf16.mxu1 %v1444_v41 }
  0xbb   : > { %1087 = vmatpush3.bf16.msra.mxu0 %v1235_v35  ;;  %1118 = vmatpush3.bf16.msra.mxu1 %v1245_v46 }
  0xbc   : > { %1088 = vmatprep.subr.bf16.mxu0 %v1236_v36  ;;  %1119 = vmatprep.subr.bf16.mxu1 %v1444_v41 }
  0xbf   : > { %1089 = vmatpush3.bf16.msra.mxu0 %v1237_v37  ;;  %1120 = vmatpush3.bf16.msra.mxu1 %v1246_v0 }
  0xc0   : > { %1090 = vmatprep.subr.bf16.mxu0 %v1238_v38  ;;  %1121 = vmatprep.subr.bf16.mxu1 %v1444_v41 }
  0xc3   : > { %1091 = vmatpush3.bf16.msra.mxu0 %v1239_v39  ;;  %1122 = vmatpush3.bf16.msra.mxu1 %v1247_v1 }
 0x179   : > { %v1048_v47 = vpop.f32.mrb[0].mxu0  ;;  %v1070_v48 = vpop.f32.mrb[0].mxu1 }
 0x17a   : > { %v1049_v50 = vpop.f32.mrb[1].mxu0  ;;  %v1071_v51 = vpop.f32.mrb[1].mxu1 }
 0x17b   : > { %v1050_v52 = vadd.f32 %v1049_v50, %v1048_v47  ;;  %v1072_v53 = vadd.f32 %v1071_v51, %v1070_v48  ;;  %v1051_v54 = vpop.f32.mrb[2].mxu0  ;;  %v1073_v55 = vpop.f32.mrb[2].mxu1 }
 0x17c   : > { %v1052_v56 = vpop.f32.mrb[3].mxu0  ;;  %v1074_v57 = vpop.f32.mrb[3].mxu1 }
 0x17d   : > { %v518_v58 = vadd.f32 %v1050_v52, %v984_v49  ;;  %v558_v59 = vadd.f32 %v1072_v53, %v984_v49 }
 0x17f   : > { %v563_v60 = vmax.f32 %v518_v58, 0.0  ;;  %v564_v61 = vmax.f32 %v558_v59, 0.0 }
 0x181   : > { %v598_v62 = vpack.c.bf16 %v563_v60, %v563_v60  ;;  %v599_v63 = vpack.c.bf16 %v564_v61, %v564_v61 }
 0x183   : > { %734 = vmatprep.mubr.bf16.mxu0 %v599_v63 }
 0x184   : > { %735 = vmatmul.mubr.bf16.vlgmr.msra.gmra.mrb[4].mxu0 %v598_v62 }
 0x257   : > { %v1092_v2 = vpop.f32.mrb[4].mxu0 }
 0x258   : > { %v1093_v4 = vpop.f32.mrb[5].mxu0 }
 0x259   : > { %v1094_v5 = vadd.f32 %v1093_v4, %v1092_v2  ;;  %v1095_v6 = vpop.f32.mrb[6].mxu0 }
 0x25a   : > { %v1096_v7 = vpop.f32.mrb[7].mxu0 }
 0x25b   : > { %v737_v8 = vadd.f32 %v1094_v5, %v1001_v3 }
 0x25d   : > { %v742_v9 = vmax.f32 %v737_v8, 0.0 }
 0x25f   : > { %v760_v10 = vpack.c.bf16 %v742_v9, %v742_v9 }
 0x261   : > { %1124 = vmatmul.mubr.bf16.vlgmr.msra.gmra.mrb[4].mxu1 %v760_v10 }
 0x334   : > { %v849_v12 = vpop.f32.mrb[4].mxu1 }
 0x335   : > { %v850_v13 = vadd.f32 %v1018_v11, %v849_v12  ;;  %v1125_v14 = vpop.f32.mrb[5].mxu1 }
 0x336   : > { %v852_v15 = vpop.f32.mrb[6].mxu1 }
 0x337   : > { %855 = vst [vmem:[%s338_s15] sm:$0xff] %v850_v13  ;;  %v1126_v16 = vpop.f32.mrb[7].mxu1 }
 0x338   : > { %1375 = shalt.err (!%p1372_p4)
}
 0x339   : > { %s1376_s8 = scalar_lea.hbm %s1721_s21, 128  ;;  %s1380_s14 = scalar_lea.hbm %s1771_s7, 384 }
 0x33a   : > { %p1377_p13 = scmp.ne.s32.totalorder %s1721_s21, %s1376_s8  ;;  %p1381_p8 = scmp.lt.u32.totalorder %s1721_s21, %s1771_s7 }
 0x33b   : > { %p1382_p12 = scmp.lt.u32.totalorder %s1380_s14, %s1376_s8  ;;  %p1384_p0 = scmp.lt.u32.totalorder %s1376_s8, %s1721_s21 }
 0x33c   : > { %p1378_p9 = pnand %p1377_p13, %p1640_p5 }
 0x33d   : > { %p1383_p6 = por %p1382_p12, %p1381_p8 }
 0x33e   : > { %p1379_p10 = pneg %p1378_p9 }
 0x33f   : > { %p1385_p3 = por %p1384_p0, %p1383_p6 }
 0x341   : > { %p1386_p7 = pnand %p1385_p3, %p1379_p10 }
 0x343   : > { %1389 = shalt.err (!%p1386_p7)
}
 0x344   : > { %1141 = dma.vmem_to_hbm [thread:$0]  (%p1640_p5), %s1723_s29, 128, %s1721_s21, %s857_s16  }
 0x345 PF: > { %s1791_s15 = sld [smem:[#allocation15_spill]]  ;;  %p1168_p11 = scmp.ge.s32.totalorder %s1436_s27, 2 }
 0x346   : > { %s882_s12 = sand.u32 1, %s1424_s24  }
 0x347   : > { %s883_s17 = scalar_lea.sflag [#allocation4], %s882_s12 }
 0x34b   : > { %p1792_p1 = scmp.ne.s32.totalorder %s1791_s15, 0 }
 0x34d   : > { %p1158_p2 = pnand %p1168_p11, %p1792_p1 }
 0x34f   : > { %1419 = dma.done.wait (!%p1158_p2), %s883_s17, 128  }
 0x350   : > { %1421 = vsyncadd (!%p1158_p2), %s883_s17, 4294967168  ;;  %p22_p4 = scmp.ge.s32.totalorder %s1626_s22, 5   ;;  %s1793_s24 = smov %s1428_s25 }
 0x351   : > { %s1794_s25 = smov %s1432_s26  ;;  %s1795_s26 = smov %s1636_s18 }
 0x352   : > { %s1796_s27 = smov %s1626_s22  ;;  %24 = sbr.rel (!%p22_p4) target bundleno = 7 (0x7), region = 105 }
 0x359   :  { %888 = vsyncpa [#allocation3], 1 }
 0x35a   :  { %890 = vsyncpa [#allocation3 + $0x1], 1 }
 0x35b   :  { %891 = vsyncpa [#allocation6], 1 }
 0x35c   :  { %892 = vsyncpa [#allocation9], 1 }
 0x35d   :  { %893 = vsyncpa [#allocation4], 1 }
 0x35e   :  { %895 = vsyncpa [#allocation4 + $0x1], 1 }

</bundles_post_ra>
